<compile_context>
chip_gen: v7x
topology: tpu7x:2x2x1
jax: 0.10.0
libtpu: 0.0.40
codegen_flags: <defaults>
</compile_context>

<pallas_src>
import jax
import jax.numpy as jnp
from jax.experimental import pallas as pl
from jax.experimental.pallas import tpu as pltpu

_MIN = 1e-05
_MAX = 1e6

# ~2 MiB per block; with double-buffered input + output that is ~8 MiB resident,
# which fits every generation's scoped-VMEM default and leaves headroom on v7x.
_TARGET_BLOCK_BYTES = 2 * 1024 * 1024
_MAX_BLOCK_COLS = 2048


def _round_down(x, m):
    return (x // m) * m


def _sublane_multiple(dtype):
    # Minimum second-to-last block dim per dtype packing (f32: 8, bf16: 16, int8/fp8: 32).
    return {4: 8, 2: 16, 1: 32}[jnp.dtype(dtype).itemsize]


def _choose_block(M, N, dtype):
    itemsize = jnp.dtype(dtype).itemsize
    sub = _sublane_multiple(dtype)
    # Lane (last) dim: lane-dense (multiple of 128) and as wide as practical; fall back to
    # the full feature width when N is not 128-aligned (full-dim blocks are always legal).
    if N % 128 == 0:
        block_cols = min(N, _MAX_BLOCK_COLS)
    else:
        block_cols = N
    # Row dim: fill the ~2 MiB budget. If the whole row extent fits, take it as a single
    # full-dim block (legal regardless of alignment, avoids any overhang).
    rows_budget = max(1, _TARGET_BLOCK_BYTES // (block_cols * itemsize))
    if M <= rows_budget or M <= sub:
        block_rows = M
    else:
        block_rows = max(sub, _round_down(rows_budget, sub))
    return block_rows, block_cols


def _mean_act_kernel(x_ref, o_ref):
    # Elementwise hot path: exp on the EUP, clamp on the VPU.
    # Compute in f32 regardless of input dtype; store back in the I/O dtype.
    x = x_ref[...]
    y = jnp.exp(x.astype(jnp.float32))
    y = jnp.clip(y, _MIN, _MAX)
    o_ref[...] = y.astype(o_ref.dtype)


def mean_act(x):
    """MeanAct: clamp(exp(x), 1e-5, 1e6), elementwise, any-rank input."""
    orig_shape = x.shape
    if x.ndim == 1:
        x2 = x.reshape(1, -1)
    elif x.ndim == 2:
        x2 = x
    else:
        x2 = x.reshape(-1, orig_shape[-1])
    M, N = x2.shape

    br, bc = _choose_block(M, N, x2.dtype)
    grid = (pl.cdiv(M, br), pl.cdiv(N, bc))

    out = pl.pallas_call(
        _mean_act_kernel,
        out_shape=jax.ShapeDtypeStruct((M, N), x2.dtype),
        grid=grid,
        in_specs=[pl.BlockSpec((br, bc), lambda i, j: (i, j))],
        out_specs=pl.BlockSpec((br, bc), lambda i, j: (i, j)),
        compiler_params=pltpu.CompilerParams(
            dimension_semantics=("parallel", "parallel"),
            vmem_limit_bytes=32 * 1024 * 1024,
        ),
    )(x2)
    return out.reshape(orig_shape)


if __name__ == "__main__":
    key = jax.random.PRNGKey(0)
    k1, k2, k3 = jax.random.split(key, 3)

    # scDeepCluster-style decoder pre-activation: [batch, genes]
    x = jax.random.normal(k1, (64, 512), dtype=jnp.float32) * 3.0
    y = jax.block_until_ready(mean_act(x))
    y_ref = jnp.clip(jnp.exp(x), _MIN, _MAX)
    assert y.shape == x.shape and y.dtype == x.dtype
    assert jnp.allclose(y, y_ref, rtol=1e-6, atol=1e-6)

    # Ragged shape: no wrapper-side padding; full-dim blocks handle it.
    xr = jax.random.normal(k2, (50, 300), dtype=jnp.float32) * 3.0
    yr = jax.block_until_ready(mean_act(xr))
    yr_ref = jnp.clip(jnp.exp(xr), _MIN, _MAX)
    assert yr.shape == xr.shape and yr.dtype == xr.dtype
    assert jnp.allclose(yr, yr_ref, rtol=1e-6, atol=1e-6)

    # bf16 input: HBM traffic stays bf16; compute in f32 inside the tile (16-row sublane min).
    xb = (jax.random.normal(k3, (32, 256), dtype=jnp.float32) * 3.0).astype(jnp.bfloat16)
    yb = jax.block_until_ready(mean_act(xb))
    yb_ref = jnp.clip(jnp.exp(xb.astype(jnp.float32)), _MIN, _MAX).astype(jnp.bfloat16)
    assert yb.shape == xb.shape and yb.dtype == jnp.bfloat16
    assert jnp.allclose(yb.astype(jnp.float32), yb_ref.astype(jnp.float32), rtol=2e-2, atol=2e-2)

    print("KERNEL_OK")
</pallas_src>

<mosaic_0001>
module attributes {stable_mosaic.version = 11 : i64} {
  func.func @_mean_act_kernel(%arg0: i32, %arg1: i32, %arg2: memref<64x512xf32, #tpu.memory_space<vmem>>, %arg3: memref<64x512xf32, #tpu.memory_space<vmem>>) attributes {dimension_semantics = [#tpu.dimension_semantics<parallel>, #tpu.dimension_semantics<parallel>], iteration_bounds = array<i64: 1, 1>, scalar_prefetch = 0 : i64, scratch_operands = 0 : i64, tpu.core_type = #tpu.core_type<tc>, window_params = [{transform_indices = @transform_0, window_bounds = array<i64: 64, 512>}, {transform_indices = @transform_1, window_bounds = array<i64: 64, 512>}]} {
    %c0 = arith.constant 0 : index
    %c0_0 = arith.constant 0 : index
    %0 = vector.load %arg2[%c0, %c0_0] : memref<64x512xf32, #tpu.memory_space<vmem>>, vector<64x512xf32>
    %1 = math.exp %0 : vector<64x512xf32>
    %cst = arith.constant 9.99999974E-6 : f32
    %cst_1 = arith.constant 1.000000e+06 : f32
    %2 = vector.broadcast %cst : f32 to vector<64x512xf32>
    %3 = arith.maximumf %2, %1 : vector<64x512xf32>
    %4 = vector.broadcast %cst_1 : f32 to vector<64x512xf32>
    %5 = arith.minimumf %4, %3 : vector<64x512xf32>
    %c0_2 = arith.constant 0 : index
    %c0_3 = arith.constant 0 : index
    %6 = vector.load %arg3[%c0_2, %c0_3] : memref<64x512xf32, #tpu.memory_space<vmem>>, vector<64x512xf32>
    tpu.vector_store %arg3[%c0_2, %c0_3], %5 {strides = array<i32>} : memref<64x512xf32, #tpu.memory_space<vmem>>, vector<64x512xf32>,
    return
  }
  func.func @transform_0(%arg0: i32, %arg1: i32) -> (i32, i32) {
    %c0_i32 = arith.constant 0 : i32
    return %arg0, %arg1 : i32, i32
  }
  func.func @transform_1(%arg0: i32, %arg1: i32) -> (i32, i32) {
    %c0_i32 = arith.constant 0 : i32
    return %arg0, %arg1 : i32, i32
  }
}

</mosaic_0001>

<bundles_post_ra>
// kernel: tpu_custom_call.1
= control target key start
LH: loop header
LB: loop body
LE: loop exit
PB: predicated region body
PF: predicated region fallthrough
CT: control target
= control target key end

     0   :  { %6 = vsyncpa [#allocation3], 0  ;;  %s392_s0 = inlined_call_operand.hbm [shape: f32[64,512], index: 0, kind: input, shape index: {}]   ;;  %s393_s1 = inlined_call_operand.hbm [shape: f32[64,512], index: 1, kind: output, shape index: {}]  }
   0x1   :  { %7 = vsyncpa [#allocation4], 0  ;;  %s348_s6 = smov [#allocation2]   ;;  %s300_s10 = scalar_lea.hbm %s392_s0, 4096 }
   0x2   :  { %s13_s7 = sshll.u32 %s348_s6, 4  ;;  %p301_p0 = scmp.ne.s32.totalorder %s392_s0, %s300_s10  ;;  %s14_s7 = int_to_ptr.vmem [resolvable:$true] %s13_s7 }
   0x3   :  { %p304_p1 = scmp.lt.u32.totalorder %s300_s10, %s392_s0 }
   0x5   :  { %p306_p2 = pnand %p304_p1, %p301_p0 }
   0x7   :  { %309 = shalt.err (!%p306_p2)
}
   0x8   :  { %s310_s15 = scalar_lea.vmem %s14_s7, 4096  ;;  %p315_p4 = scmp.lt.s32.totalorder %s14_s7, %s14_s7 }
   0x9   :  { %p311_p3 = scmp.ne.s32.totalorder %s14_s7, %s310_s15  ;;  %p316_p5 = scmp.lt.s32.totalorder %s310_s15, %s310_s15 }
   0xb   :  { %p317_p6 = por %p316_p5, %p315_p4 }
   0xd   :  { %p318_p7 = pnand %p317_p6, %p311_p3 }
   0xf   :  { %321 = shalt.err (!%p318_p7)
}
  0x10   :  { %s349_s16 = smov 512   ;;  %s350_s17 = smov 32  }
  0x11   :  { %19 = dma.hbm_to_vmem [thread:$0]  %s392_s0, 4096, %s14_s7, [#allocation3], %s349_s16, %s349_s16, %s350_s17  }
  0x12   :  { %344 = dma.done.wait [#allocation3], 4096  }
  0x13   :  { %345 = vsyncadd [#allocation3], 4294963200  ;;  %v23_v0 = vld [vmem:[#allocation2] sm:$0xff]  ;;  %v24_v1 = vld [vmem:[#allocation2 + $0x8] sm:$0xff]  ;;  %s351_s0 = smov [#allocation5]  }
  0x14   :  { %v25_v2 = vld [vmem:[#allocation2 + $0x10] sm:$0xff]  ;;  %v55_v3 = vmul.f32 1.442695, %v23_v0  ;;  %v57_v4 = vmul.f32 1.442695, %v24_v1  ;;  %v26_v6 = vld [vmem:[#allocation2 + $0x18] sm:$0xff] }
  0x15   :  { %v59_v5 = vmul.f32 1.442695, %v25_v2  ;;  %v27_v7 = vld [vmem:[#allocation2 + $0x20] sm:$0xff]  ;;  %v28_v8 = vld [vmem:[#allocation2 + $0x28] sm:$0xff]  ;;  %v61_v9 = vmul.f32 1.442695, %v26_v6 }
  0x16   :  { %236 = vpow2.f32 %v55_v3  ;;  %v63_v10 = vmul.f32 1.442695, %v27_v7  ;;  %v65_v11 = vmul.f32 1.442695, %v28_v8  ;;  %v29_v12 = vld [vmem:[#allocation2 + $0x30] sm:$0xff]  ;;  %v30_v13 = vld [vmem:[#allocation2 + $0x38] sm:$0xff] }
  0x17   :  { %238 = vpow2.f32 %v57_v4  ;;  %v31_v14 = vld [vmem:[#allocation2 + $0x40] sm:$0xff]  ;;  %v67_v15 = vmul.f32 1.442695, %v29_v12  ;;  %v69_v16 = vmul.f32 1.442695, %v30_v13  ;;  %v32_v17 = vld [vmem:[#allocation2 + $0x48] sm:$0xff] }
  0x18   :  { %240 = vpow2.f32 %v59_v5  ;;  %v33_v18 = vld [vmem:[#allocation2 + $0x50] sm:$0xff]  ;;  %v34_v19 = vld [vmem:[#allocation2 + $0x58] sm:$0xff]  ;;  %v71_v20 = vmul.f32 1.442695, %v31_v14  ;;  %v73_v21 = vmul.f32 1.442695, %v32_v17 }
  0x19   :  { %242 = vpow2.f32 %v61_v9  ;;  %v35_v22 = vld [vmem:[#allocation2 + $0x60] sm:$0xff]  ;;  %v36_v23 = vld [vmem:[#allocation2 + $0x68] sm:$0xff]  ;;  %v37_v24 = vld [vmem:[#allocation2 + $0x70] sm:$0xff]  ;;  %v75_v25 = vmul.f32 1.442695, %v33_v18  ;;  %s220_s20 = sshll.u32 %s351_s0, 4  ;;  %s221_s20 = int_to_ptr.vmem [resolvable:$true] %s220_s20 }
  0x1a   :  { %244 = vpow2.f32 %v63_v10  ;;  %v77_v26 = vmul.f32 1.442695, %v34_v19  ;;  %v79_v27 = vmul.f32 1.442695, %v35_v22  ;;  %v81_v28 = vmul.f32 1.442695, %v36_v23  ;;  %p327_p9 = scmp.lt.s32.totalorder %s221_s20, %s221_s20 }
  0x1b   :  { %246 = vpow2.f32 %v65_v11  ;;  %v38_v29 = vld [vmem:[#allocation2 + $0x78] sm:$0xff]  ;;  %v39_v30 = vld [vmem:[#allocation2 + $0x80] sm:$0xff]  ;;  %v40_v31 = vld [vmem:[#allocation2 + $0x88] sm:$0xff]  ;;  %v83_v32 = vmul.f32 1.442695, %v37_v24  ;;  %s322_s21 = scalar_lea.vmem %s221_s20, 4096 }
  0x1c   :  { %248 = vpow2.f32 %v67_v15  ;;  %v85_v33 = vmul.f32 1.442695, %v38_v29  ;;  %v87_v34 = vmul.f32 1.442695, %v39_v30  ;;  %v89_v35 = vmul.f32 1.442695, %v40_v31  ;;  %p323_p8 = scmp.ne.s32.totalorder %s221_s20, %s322_s21  ;;  %p328_p10 = scmp.lt.s32.totalorder %s322_s21, %s322_s21 }
  0x1d   :  { %250 = vpow2.f32 %v69_v16  ;;  %v41_v36 = vld [vmem:[#allocation2 + $0x90] sm:$0xff]  ;;  %v42_v37 = vld [vmem:[#allocation2 + $0x98] sm:$0xff]  ;;  %v43_v38 = vld [vmem:[#allocation2 + $0xa0] sm:$0xff] }
  0x1e   :  { %252 = vpow2.f32 %v71_v20  ;;  %v91_v40 = vmul.f32 1.442695, %v41_v36  ;;  %v93_v41 = vmul.f32 1.442695, %v42_v37  ;;  %v95_v42 = vmul.f32 1.442695, %v43_v38  ;;  %p329_p11 = por %p328_p10, %p327_p9 }
  0x1f   :  { %254 = vpow2.f32 %v73_v21  ;;  %v44_v45 = vld [vmem:[#allocation2 + $0xa8] sm:$0xff]  ;;  %v45_v46 = vld [vmem:[#allocation2 + $0xb0] sm:$0xff]  ;;  %v46_v47 = vld [vmem:[#allocation2 + $0xb8] sm:$0xff] }
  0x20   :  { %v237_v39 = vpop.eup %236  ;;  %256 = vpow2.f32 %v75_v25  ;;  %v97_v50 = vmul.f32 1.442695, %v44_v45  ;;  %v99_v51 = vmul.f32 1.442695, %v45_v46  ;;  %v101_v55 = vmul.f32 1.442695, %v46_v47  ;;  %p330_p12 = pnand %p329_p11, %p323_p8 }
  0x21   :  { %v239_v43 = vpop.eup %238  ;;  %v119_v44 = vmax.f32 %v237_v39, 1e-05  ;;  %258 = vpow2.f32 %v77_v26  ;;  %v47_v59 = vld [vmem:[#allocation2 + $0xc0] sm:$0xff]  ;;  %v48_v60 = vld [vmem:[#allocation2 + $0xc8] sm:$0xff]  ;;  %v49_v8 = vld [vmem:[#allocation2 + $0xd0] sm:$0xff] }
  0x22   :  { %v241_v48 = vpop.eup %240  ;;  %v120_v49 = vmax.f32 %v239_v43, 1e-05  ;;  %260 = vpow2.f32 %v79_v27  ;;  %v103_v0 = vmul.f32 1.442695, %v47_v59  ;;  %v105_v4 = vmul.f32 1.442695, %v48_v60 }
  0x23   :  { %v243_v52 = vpop.eup %242  ;;  %v151_v53 = vmin.f32 %v119_v44, 1000000.0  ;;  %v121_v54 = vmax.f32 %v241_v48, 1e-05  ;;  %262 = vpow2.f32 %v81_v28  ;;  %v50_v9 = vld [vmem:[#allocation2 + $0xd8] sm:$0xff]  ;;  %v51_v21 = vld [vmem:[#allocation2 + $0xe0] sm:$0xff] }
  0x24   :  { %v245_v56 = vpop.eup %244  ;;  %v152_v57 = vmin.f32 %v120_v49, 1000000.0  ;;  %v122_v58 = vmax.f32 %v243_v52, 1e-05  ;;  %264 = vpow2.f32 %v83_v32  ;;  %v107_v13 = vmul.f32 1.442695, %v49_v8 }
  0x25   :  { %v247_v61 = vpop.eup %246  ;;  %183 = vst [vmem:[#allocation5] sm:$0xff] %v151_v53  ;;  %v153_v62 = vmin.f32 %v121_v54, 1000000.0  ;;  %v123_v63 = vmax.f32 %v245_v56, 1e-05  ;;  %266 = vpow2.f32 %v85_v33  ;;  %v52_v25 = vld [vmem:[#allocation2 + $0xe8] sm:$0xff] }
  0x26   :  { %v249_v1 = vpop.eup %248  ;;  %184 = vst [vmem:[#allocation5 + $0x8] sm:$0xff] %v152_v57  ;;  %v154_v2 = vmin.f32 %v122_v58, 1000000.0  ;;  %v124_v3 = vmax.f32 %v247_v61, 1e-05  ;;  %268 = vpow2.f32 %v87_v34  ;;  %v53_v33 = vld [vmem:[#allocation2 + $0xf0] sm:$0xff] }
  0x27   :  { %v251_v5 = vpop.eup %250  ;;  %185 = vst [vmem:[#allocation5 + $0x10] sm:$0xff] %v153_v62  ;;  %v155_v6 = vmin.f32 %v123_v63, 1000000.0  ;;  %v125_v7 = vmax.f32 %v249_v1, 1e-05  ;;  %270 = vpow2.f32 %v89_v35  ;;  %v54_v37 = vld [vmem:[#allocation2 + $0xf8] sm:$0xff] }
  0x28   :  { %v253_v10 = vpop.eup %252  ;;  %186 = vst [vmem:[#allocation5 + $0x18] sm:$0xff] %v154_v2  ;;  %v156_v11 = vmin.f32 %v124_v3, 1000000.0  ;;  %v126_v12 = vmax.f32 %v251_v5, 1e-05  ;;  %272 = vpow2.f32 %v91_v40 }
  0x29   :  { %v255_v14 = vpop.eup %254  ;;  %187 = vst [vmem:[#allocation5 + $0x20] sm:$0xff] %v155_v6  ;;  %v157_v15 = vmin.f32 %v125_v7, 1000000.0  ;;  %v127_v16 = vmax.f32 %v253_v10, 1e-05  ;;  %274 = vpow2.f32 %v93_v41 }
  0x2a   :  { %v109_v17 = vmul.f32 1.442695, %v50_v9  ;;  %v257_v18 = vpop.eup %256  ;;  %188 = vst [vmem:[#allocation5 + $0x28] sm:$0xff] %v156_v11  ;;  %v158_v19 = vmin.f32 %v126_v12, 1000000.0  ;;  %276 = vpow2.f32 %v95_v42 }
  0x2b   :  { %v128_v20 = vmax.f32 %v255_v14, 1e-05  ;;  %v259_v22 = vpop.eup %258  ;;  %189 = vst [vmem:[#allocation5 + $0x30] sm:$0xff] %v157_v15  ;;  %v159_v23 = vmin.f32 %v127_v16, 1000000.0  ;;  %278 = vpow2.f32 %v97_v50 }
  0x2c   :  { %v129_v24 = vmax.f32 %v257_v18, 1e-05  ;;  %v261_v26 = vpop.eup %260  ;;  %190 = vst [vmem:[#allocation5 + $0x38] sm:$0xff] %v158_v19  ;;  %v130_v28 = vmax.f32 %v259_v22, 1e-05  ;;  %280 = vpow2.f32 %v99_v51 }
  0x2d   :  { %v160_v27 = vmin.f32 %v128_v20, 1000000.0  ;;  %v111_v29 = vmul.f32 1.442695, %v51_v21  ;;  %v263_v30 = vpop.eup %262  ;;  %191 = vst [vmem:[#allocation5 + $0x40] sm:$0xff] %v159_v23  ;;  %282 = vpow2.f32 %v101_v55 }
  0x2e   :  { %v161_v31 = vmin.f32 %v129_v24, 1000000.0  ;;  %v131_v32 = vmax.f32 %v261_v26, 1e-05  ;;  %v265_v34 = vpop.eup %264  ;;  %v162_v35 = vmin.f32 %v130_v28, 1000000.0  ;;  %284 = vpow2.f32 %v103_v0 }
  0x2f   :  { %192 = vst [vmem:[#allocation5 + $0x48] sm:$0xff] %v160_v27  ;;  %v132_v36 = vmax.f32 %v263_v30, 1e-05  ;;  %v267_v38 = vpop.eup %266  ;;  %v133_v40 = vmax.f32 %v265_v34, 1e-05  ;;  %286 = vpow2.f32 %v105_v4 }
  0x30   :  { %193 = vst [vmem:[#allocation5 + $0x50] sm:$0xff] %v161_v31  ;;  %v163_v39 = vmin.f32 %v131_v32, 1000000.0  ;;  %v113_v41 = vmul.f32 1.442695, %v52_v25  ;;  %v269_v42 = vpop.eup %268  ;;  %194 = vst [vmem:[#allocation5 + $0x58] sm:$0xff] %v162_v35  ;;  %288 = vpow2.f32 %v107_v13 }
  0x31   :  { %v164_v43 = vmin.f32 %v132_v36, 1000000.0  ;;  %v134_v44 = vmax.f32 %v267_v38, 1e-05  ;;  %v115_v45 = vmul.f32 1.442695, %v53_v33  ;;  %v271_v46 = vpop.eup %270  ;;  %290 = vpow2.f32 %v109_v17 }
  0x32   :  { %195 = vst [vmem:[#allocation5 + $0x60] sm:$0xff] %v163_v39  ;;  %v165_v47 = vmin.f32 %v133_v40, 1000000.0  ;;  %v135_v48 = vmax.f32 %v269_v42, 1e-05  ;;  %v273_v50 = vpop.eup %272  ;;  %292 = vpow2.f32 %v111_v29 }
  0x33   :  { %v117_v49 = vmul.f32 1.442695, %v54_v37  ;;  %196 = vst [vmem:[#allocation5 + $0x68] sm:$0xff] %v164_v43  ;;  %v166_v51 = vmin.f32 %v134_v44, 1000000.0  ;;  %v275_v53 = vpop.eup %274  ;;  %294 = vpow2.f32 %v113_v41 }
  0x34   :  { %v136_v52 = vmax.f32 %v271_v46, 1e-05  ;;  %197 = vst [vmem:[#allocation5 + $0x70] sm:$0xff] %v165_v47  ;;  %v167_v54 = vmin.f32 %v135_v48, 1000000.0  ;;  %v277_v56 = vpop.eup %276  ;;  %296 = vpow2.f32 %v115_v45 }
  0x35   :  { %v137_v55 = vmax.f32 %v273_v50, 1e-05  ;;  %198 = vst [vmem:[#allocation5 + $0x78] sm:$0xff] %v166_v51  ;;  %v138_v58 = vmax.f32 %v275_v53, 1e-05  ;;  %v279_v59 = vpop.eup %278  ;;  %298 = vpow2.f32 %v117_v49 }
  0x36   :  { %v168_v57 = vmin.f32 %v136_v52, 1000000.0  ;;  %199 = vst [vmem:[#allocation5 + $0x80] sm:$0xff] %v167_v54  ;;  %v139_v61 = vmax.f32 %v277_v56, 1e-05  ;;  %v281_v62 = vpop.eup %280 }
  0x37   :  { %v169_v60 = vmin.f32 %v137_v55, 1000000.0  ;;  %v170_v63 = vmin.f32 %v138_v58, 1000000.0  ;;  %v140_v0 = vmax.f32 %v279_v59, 1e-05  ;;  %v283_v1 = vpop.eup %282 }
  0x38   :  { %200 = vst [vmem:[#allocation5 + $0x88] sm:$0xff] %v168_v57  ;;  %v171_v2 = vmin.f32 %v139_v61, 1000000.0  ;;  %v141_v3 = vmax.f32 %v281_v62, 1e-05  ;;  %v285_v4 = vpop.eup %284 }
  0x39   :  { %201 = vst [vmem:[#allocation5 + $0x90] sm:$0xff] %v169_v60  ;;  %202 = vst [vmem:[#allocation5 + $0x98] sm:$0xff] %v170_v63  ;;  %v172_v5 = vmin.f32 %v140_v0, 1000000.0  ;;  %v142_v6 = vmax.f32 %v283_v1, 1e-05  ;;  %v287_v7 = vpop.eup %286 }
  0x3a   :  { %203 = vst [vmem:[#allocation5 + $0xa0] sm:$0xff] %v171_v2  ;;  %v173_v8 = vmin.f32 %v141_v3, 1000000.0  ;;  %v143_v9 = vmax.f32 %v285_v4, 1e-05  ;;  %v289_v10 = vpop.eup %288 }
  0x3b   :  { %204 = vst [vmem:[#allocation5 + $0xa8] sm:$0xff] %v172_v5  ;;  %v174_v11 = vmin.f32 %v142_v6, 1000000.0  ;;  %v144_v12 = vmax.f32 %v287_v7, 1e-05  ;;  %v291_v13 = vpop.eup %290 }
  0x3c   :  { %205 = vst [vmem:[#allocation5 + $0xb0] sm:$0xff] %v173_v8  ;;  %v175_v14 = vmin.f32 %v143_v9, 1000000.0  ;;  %v145_v15 = vmax.f32 %v289_v10, 1e-05  ;;  %v293_v16 = vpop.eup %292 }
  0x3d   :  { %206 = vst [vmem:[#allocation5 + $0xb8] sm:$0xff] %v174_v11  ;;  %v176_v17 = vmin.f32 %v144_v12, 1000000.0  ;;  %v146_v18 = vmax.f32 %v291_v13, 1e-05  ;;  %v295_v19 = vpop.eup %294 }
  0x3e   :  { %207 = vst [vmem:[#allocation5 + $0xc0] sm:$0xff] %v175_v14  ;;  %v177_v20 = vmin.f32 %v145_v15, 1000000.0  ;;  %v147_v21 = vmax.f32 %v293_v16, 1e-05  ;;  %v297_v22 = vpop.eup %296 }
  0x3f   :  { %208 = vst [vmem:[#allocation5 + $0xc8] sm:$0xff] %v176_v17  ;;  %v178_v23 = vmin.f32 %v146_v18, 1000000.0  ;;  %v148_v24 = vmax.f32 %v295_v19, 1e-05  ;;  %v299_v25 = vpop.eup %298 }
  0x40   :  { %209 = vst [vmem:[#allocation5 + $0xd0] sm:$0xff] %v177_v20  ;;  %v179_v26 = vmin.f32 %v147_v21, 1000000.0  ;;  %v149_v27 = vmax.f32 %v297_v22, 1e-05 }
  0x41   :  { %210 = vst [vmem:[#allocation5 + $0xd8] sm:$0xff] %v178_v23  ;;  %v180_v28 = vmin.f32 %v148_v24, 1000000.0  ;;  %v150_v29 = vmax.f32 %v299_v25, 1e-05 }
  0x42   :  { %211 = vst [vmem:[#allocation5 + $0xe0] sm:$0xff] %v179_v26  ;;  %v181_v30 = vmin.f32 %v149_v27, 1000000.0 }
  0x43   :  { %212 = vst [vmem:[#allocation5 + $0xe8] sm:$0xff] %v180_v28  ;;  %v182_v31 = vmin.f32 %v150_v29, 1000000.0 }
  0x44   :  { %213 = vst [vmem:[#allocation5 + $0xf0] sm:$0xff] %v181_v30 }
  0x45   :  { %214 = vst [vmem:[#allocation5 + $0xf8] sm:$0xff] %v182_v31 }
  0x46   :  { %333 = shalt.err (!%p330_p12)
}
  0x47   :  { %s334_s24 = scalar_lea.hbm %s393_s1, 4096 }
  0x48   :  { %p335_p13 = scmp.ne.s32.totalorder %s393_s1, %s334_s24  ;;  %p338_p0 = scmp.lt.u32.totalorder %s334_s24, %s393_s1 }
  0x4a   :  { %p340_p1 = pnand %p338_p0, %p335_p13 }
  0x4c   :  { %343 = shalt.err (!%p340_p1)
}
  0x4d   :  { %226 = dma.vmem_to_hbm [thread:$0]  %s221_s20, 4096, %s393_s1, [#allocation4], %s349_s16, %s349_s16, %s350_s17  }
  0x4e   :  { %346 = dma.done.wait [#allocation4], 4096  }
  0x4f   :  { %347 = vsyncadd [#allocation4], 4294963200 }
  0x50   :  { %230 = vsyncpa [#allocation3], 1 }
  0x51   :  { %231 = vsyncpa [#allocation4], 1 }

</bundles_post_ra>
